<compile_context>
chip_gen: v7x
topology: tpu7x:2x2x1
jax: 0.10.0
libtpu: 0.0.40
codegen_flags: <defaults>
</compile_context>

<pallas_src>
import functools

import jax
import jax.numpy as jnp
from jax.experimental import pallas as pl
from jax.experimental.pallas import tpu as pltpu

_CHUNK = 4096     # lanes per inner compute chunk (bounds live intermediates)
_TB_MAX = 32768   # max lanes per grid step (multiple of _CHUNK)


def _round_up(n, m):
    return ((n + m - 1) // m) * m


def _mlp_kernel(x_ref, w1_ref, b1_ref, w2_ref, b2_ref, w3_ref, b3_ref, o_ref,
                *, chunk, num_chunks):
    # x_ref: (1, TB) f32   batch on lanes
    # w1_ref: (64, 1) f32  b1_ref: (64, 1) f32
    # w2_ref: (32, 64) bf16  b2_ref: (32, 1) f32
    # w3_ref: (32, 1) f32  b3_ref: (1, 1) f32
    w1 = w1_ref[...]
    b1 = b1_ref[...]
    w2 = w2_ref[...]        # bf16, grid-invariant resident
    b2 = b2_ref[...]
    w3 = w3_ref[...]
    b3 = b3_ref[...]

    # Static loop over lane chunks: keeps the single big DMA tile per grid
    # step while each chunk's h1/h2 intermediates stay ~1.5 MB (static slices
    # are free views; chunk starts are multiples of 128 lanes by construction).
    for c in range(num_chunks):
        lo, hi = c * chunk, (c + 1) * chunk
        x = x_ref[:, lo:hi]                                     # (1, chunk)

        # Layer 1 (K=1): broadcast outer product on the VPU, not the MXU.
        h1 = jnp.maximum(w1 * x + b1, 0.0)                      # (64, chunk)

        # Layer 2: the only real matmul -> single-pass bf16 MXU, f32 acc.
        h2 = jnp.dot(w2, h1.astype(jnp.bfloat16),
                     preferred_element_type=jnp.float32)        # (32, chunk)
        h2 = jnp.maximum(h2 + b2, 0.0)

        # Layer 3 (N=1): multiply + sublane reduce (VPU + XLU), lane-dense.
        out = jnp.sum(w3 * h2, axis=0, keepdims=True) + b3      # (1, chunk)
        o_ref[:, lo:hi] = out.astype(o_ref.dtype)


def _choose_tile(B):
    """Batch-tile (lanes) per grid step.

    Targets a grid of >= 2 for large B (v7x megacore sharding), caps the tile
    at _TB_MAX (well inside scoped VMEM given the in-kernel chunk loop), and
    keeps it a multiple of 128 lanes / of _CHUNK when multi-chunk.
    """
    half = max((B + 1) // 2, 1)
    t = _round_up(half, 128)
    if t > _CHUNK:
        t = _round_up(t, _CHUNK)
    return min(t, _TB_MAX)


def mlp_forward(x, params):
    """x: (B, 1) float32 (anything x.view(B,-1)-compatible with 1 feature).
    params: PyTorch-layout weights (out,in) / biases (out,). Returns (B, 1)."""
    B = x.shape[0]
    x2 = x.reshape(B, -1)                       # mimic x.view(x.size(0), -1)
    assert x2.shape[1] == 1, "MLP expects a single scalar feature per example"
    xt = x2.reshape(1, B).astype(jnp.float32)   # batch on the lane axis

    t = _choose_tile(B)
    chunk = min(_CHUNK, t)
    num_chunks = t // chunk
    B_pad = _round_up(B, t)
    if B_pad != B:
        xt = jnp.pad(xt, ((0, 0), (0, B_pad - B)))   # at most ~one tile of pad

    # Parameters in transposed (features-on-sublane) layout; w2 in bf16 so the
    # layer-2 dot lowers to one MXU pass (accumulation stays f32).
    w1 = params["w1"].astype(jnp.float32)                  # (64, 1)
    b1 = params["b1"].reshape(64, 1).astype(jnp.float32)   # (64, 1)
    w2 = params["w2"].astype(jnp.bfloat16)                 # (32, 64)
    b2 = params["b2"].reshape(32, 1).astype(jnp.float32)   # (32, 1)
    w3 = params["w3"].reshape(32, 1).astype(jnp.float32)   # (1,32) -> (32, 1)
    b3 = params["b3"].reshape(1, 1).astype(jnp.float32)    # (1, 1)

    grid = (B_pad // t,)
    const = lambda i: (0, 0)     # grid-invariant residents (weights / biases)
    in_specs = [
        pl.BlockSpec((1, t), lambda i: (0, i)),    # x tile, streamed
        pl.BlockSpec((64, 1), const),              # w1
        pl.BlockSpec((64, 1), const),              # b1
        pl.BlockSpec((32, 64), const),             # w2 (bf16)
        pl.BlockSpec((32, 1), const),              # b2
        pl.BlockSpec((32, 1), const),              # w3 (as a column)
        pl.BlockSpec((1, 1), const),               # b3
    ]
    out_specs = pl.BlockSpec((1, t), lambda i: (0, i))

    param_bytes = 4 * (64 + 64 + 32 + 32 + 1) + 2 * (32 * 64)
    cost = pl.CostEstimate(
        flops=2 * B_pad * (64 + 64 * 32 + 32) + B_pad * (64 + 32 + 1),
        transcendentals=0,
        bytes_accessed=4 * 2 * B_pad + param_bytes,
    )

    kernel = functools.partial(_mlp_kernel, chunk=chunk, num_chunks=num_chunks)
    out_t = pl.pallas_call(
        kernel,
        out_shape=jax.ShapeDtypeStruct((1, B_pad), jnp.float32),
        grid=grid,
        in_specs=in_specs,
        out_specs=out_specs,
        compiler_params=pltpu.CompilerParams(
            dimension_semantics=("parallel",),
            # 32 MiB is plenty (footprint ~2-4 MiB thanks to the chunk loop)
            # and safe on v7x's 64 MiB physical VMEM; it also overrides v5e's
            # 16 MiB scoped default.
            vmem_limit_bytes=32 * 1024 * 1024,
        ),
        cost_estimate=cost,
    )(xt, w1, b1, w2, b2, w3, b3)

    return out_t[0, :B].reshape(B, 1)


def init_params(key):
    """PyTorch-layout init mimicking nn.Linear: W (out,in), b (out,),
    uniform(-1/sqrt(fan_in), +1/sqrt(fan_in))."""
    ks = jax.random.split(key, 6)

    def lin(kw, kb, fan_in, fan_out):
        bound = 1.0 / jnp.sqrt(jnp.float32(fan_in))
        w = jax.random.uniform(kw, (fan_out, fan_in), jnp.float32, -bound, bound)
        b = jax.random.uniform(kb, (fan_out,), jnp.float32, -bound, bound)
        return w, b

    w1, b1 = lin(ks[0], ks[1], 1, 64)
    w2, b2 = lin(ks[2], ks[3], 64, 32)
    w3, b3 = lin(ks[4], ks[5], 32, 1)
    return {"w1": w1, "b1": b1, "w2": w2, "b2": b2, "w3": w3, "b3": b3}


def mlp_reference(x, p, *, mxu_dtype=jnp.float32):
    """Pure-JAX reference. mxu_dtype=jnp.bfloat16 mirrors the kernel's bf16
    MXU operands (f32 accumulation) so the tolerance can stay tight."""
    xb = x.reshape(x.shape[0], -1)
    h1 = jnp.maximum(xb @ p["w1"].T + p["b1"], 0.0)
    h2 = jnp.dot(h1.astype(mxu_dtype), p["w2"].T.astype(mxu_dtype),
                 preferred_element_type=jnp.float32)
    h2 = jnp.maximum(h2 + p["b2"], 0.0)
    return h2 @ p["w3"].T + p["b3"]


if __name__ == "__main__":
    key = jax.random.PRNGKey(0)
    k_param, k_x = jax.random.split(key)
    params = init_params(k_param)

    # B=8: single tile / single chunk; B=300: ragged batch, grid of 2;
    # B=9000: grid of 2 with the multi-chunk inner loop exercised.
    for B in (8, 300, 9000):
        x = jax.random.normal(jax.random.fold_in(k_x, B), (B, 1), jnp.float32)
        out = jax.block_until_ready(mlp_forward(x, params))
        ref = mlp_reference(x, params, mxu_dtype=jnp.bfloat16)
        assert out.shape == (B, 1)
        assert jnp.allclose(out, ref, atol=1e-3, rtol=1e-3), f"mismatch at B={B}"

    print("KERNEL_OK")
</pallas_src>

<mosaic_0001>
module attributes {stable_mosaic.version = 11 : i64} {
  func.func @_mlp_kernel(%arg0: i32, %arg1: memref<1x128xf32, #tpu.memory_space<vmem>>, %arg2: memref<64x1xf32, #tpu.memory_space<vmem>>, %arg3: memref<64x1xf32, #tpu.memory_space<vmem>>, %arg4: memref<32x64xbf16, #tpu.memory_space<vmem>>, %arg5: memref<32x1xf32, #tpu.memory_space<vmem>>, %arg6: memref<32x1xf32, #tpu.memory_space<vmem>>, %arg7: memref<1x1xf32, #tpu.memory_space<vmem>>, %arg8: memref<1x128xf32, #tpu.memory_space<vmem>>) attributes {dimension_semantics = [#tpu.dimension_semantics<parallel>], iteration_bounds = array<i64: 1>, scalar_prefetch = 0 : i64, scratch_operands = 0 : i64, tpu.core_type = #tpu.core_type<tc>, window_params = [{transform_indices = @transform_0, window_bounds = array<i64: 1, 128>}, {pipeline_mode = #tpu.pipeline_mode<synchronous>, transform_indices = @transform_1, window_bounds = array<i64: 64, 1>}, {pipeline_mode = #tpu.pipeline_mode<synchronous>, transform_indices = @transform_2, window_bounds = array<i64: 64, 1>}, {pipeline_mode = #tpu.pipeline_mode<synchronous>, transform_indices = @transform_3, window_bounds = array<i64: 32, 64>}, {pipeline_mode = #tpu.pipeline_mode<synchronous>, transform_indices = @transform_4, window_bounds = array<i64: 32, 1>}, {pipeline_mode = #tpu.pipeline_mode<synchronous>, transform_indices = @transform_5, window_bounds = array<i64: 32, 1>}, {pipeline_mode = #tpu.pipeline_mode<synchronous>, transform_indices = @transform_6, window_bounds = array<i64: 1, 1>}, {transform_indices = @transform_7, window_bounds = array<i64: 1, 128>}]} {
    %c0 = arith.constant 0 : index
    %c0_0 = arith.constant 0 : index
    %0 = vector.load %arg2[%c0, %c0_0] : memref<64x1xf32, #tpu.memory_space<vmem>>, vector<64x1xf32>
    %c0_1 = arith.constant 0 : index
    %c0_2 = arith.constant 0 : index
    %1 = vector.load %arg3[%c0_1, %c0_2] : memref<64x1xf32, #tpu.memory_space<vmem>>, vector<64x1xf32>
    %c0_3 = arith.constant 0 : index
    %c0_4 = arith.constant 0 : index
    %2 = vector.load %arg4[%c0_3, %c0_4] : memref<32x64xbf16, #tpu.memory_space<vmem>>, vector<32x64xbf16>
    %c0_5 = arith.constant 0 : index
    %c0_6 = arith.constant 0 : index
    %3 = vector.load %arg5[%c0_5, %c0_6] : memref<32x1xf32, #tpu.memory_space<vmem>>, vector<32x1xf32>
    %c0_7 = arith.constant 0 : index
    %c0_8 = arith.constant 0 : index
    %4 = vector.load %arg6[%c0_7, %c0_8] : memref<32x1xf32, #tpu.memory_space<vmem>>, vector<32x1xf32>
    %c0_9 = arith.constant 0 : index
    %c0_10 = arith.constant 0 : index
    %5 = vector.load %arg7[%c0_9, %c0_10] : memref<1x1xf32, #tpu.memory_space<vmem>>, vector<1x1xf32>
    %c0_11 = arith.constant 0 : index
    %c0_12 = arith.constant 0 : index
    %6 = vector.load %arg1[%c0_11, %c0_12] : memref<1x128xf32, #tpu.memory_space<vmem>>, vector<1x128xf32>
    %7 = vector.broadcast %0 : vector<64x1xf32> to vector<64x128xf32>
    %8 = vector.broadcast %6 : vector<1x128xf32> to vector<64x128xf32>
    %9 = arith.mulf %7, %8 : vector<64x128xf32>
    %10 = vector.broadcast %1 : vector<64x1xf32> to vector<64x128xf32>
    %11 = arith.addf %9, %10 : vector<64x128xf32>
    %cst = arith.constant 0.000000e+00 : f32
    %12 = vector.broadcast %cst : f32 to vector<64x128xf32>
    %13 = arith.maximumf %11, %12 : vector<64x128xf32>
    %14 = arith.truncf %13 : vector<64x128xf32> to vector<64x128xbf16>
    %cst_13 = arith.constant dense<0.000000e+00> : vector<32x128xf32>
    %15 = tpu.matmul %2, %14, %cst_13 {dimension_numbers = #tpu.dot_dimension_numbers<[1], [0], [0], [1], [0, 0, 1, 1], [], []>} : vector<32x64xbf16>, vector<64x128xbf16>, vector<32x128xf32> -> vector<32x128xf32>
    %16 = vector.broadcast %3 : vector<32x1xf32> to vector<32x128xf32>
    %17 = arith.addf %15, %16 : vector<32x128xf32>
    %cst_14 = arith.constant 0.000000e+00 : f32
    %18 = vector.broadcast %cst_14 : f32 to vector<32x128xf32>
    %19 = arith.maximumf %17, %18 : vector<32x128xf32>
    %20 = vector.broadcast %4 : vector<32x1xf32> to vector<32x128xf32>
    %21 = arith.mulf %20, %19 : vector<32x128xf32>
    %cst_15 = arith.constant dense<0.000000e+00> : vector<128xf32>
    %22 = vector.multi_reduction <add>, %21, %cst_15 [0] : vector<32x128xf32> to vector<128xf32>
    %23 = vector.shape_cast %22 : vector<128xf32> to vector<1x128xf32>
    %24 = vector.broadcast %5 : vector<1x1xf32> to vector<1x128xf32>
    %25 = arith.addf %23, %24 : vector<1x128xf32>
    %c0_16 = arith.constant 0 : index
    %c0_17 = arith.constant 0 : index
    %26 = vector.load %arg8[%c0_16, %c0_17] : memref<1x128xf32, #tpu.memory_space<vmem>>, vector<1x128xf32>
    tpu.vector_store %arg8[%c0_16, %c0_17], %25 {strides = array<i32>} : memref<1x128xf32, #tpu.memory_space<vmem>>, vector<1x128xf32>,
    return
  }
  func.func @transform_0(%arg0: i32) -> (i32, i32) {
    %c0_i32 = arith.constant 0 : i32
    %c0_i32_0 = arith.constant 0 : i32
    return %c0_i32, %arg0 : i32, i32
  }
  func.func @transform_1(%arg0: i32) -> (i32, i32) {
    %c0_i32 = arith.constant 0 : i32
    %c0_i32_0 = arith.constant 0 : i32
    %c0_i32_1 = arith.constant 0 : i32
    return %c0_i32, %c0_i32_0 : i32, i32
  }
  func.func @transform_2(%arg0: i32) -> (i32, i32) {
    %c0_i32 = arith.constant 0 : i32
    %c0_i32_0 = arith.constant 0 : i32
    %c0_i32_1 = arith.constant 0 : i32
    return %c0_i32, %c0_i32_0 : i32, i32
  }
  func.func @transform_3(%arg0: i32) -> (i32, i32) {
    %c0_i32 = arith.constant 0 : i32
    %c0_i32_0 = arith.constant 0 : i32
    %c0_i32_1 = arith.constant 0 : i32
    return %c0_i32, %c0_i32_0 : i32, i32
  }
  func.func @transform_4(%arg0: i32) -> (i32, i32) {
    %c0_i32 = arith.constant 0 : i32
    %c0_i32_0 = arith.constant 0 : i32
    %c0_i32_1 = arith.constant 0 : i32
    return %c0_i32, %c0_i32_0 : i32, i32
  }
  func.func @transform_5(%arg0: i32) -> (i32, i32) {
    %c0_i32 = arith.constant 0 : i32
    %c0_i32_0 = arith.constant 0 : i32
    %c0_i32_1 = arith.constant 0 : i32
    return %c0_i32, %c0_i32_0 : i32, i32
  }
  func.func @transform_6(%arg0: i32) -> (i32, i32) {
    %c0_i32 = arith.constant 0 : i32
    %c0_i32_0 = arith.constant 0 : i32
    %c0_i32_1 = arith.constant 0 : i32
    return %c0_i32, %c0_i32_0 : i32, i32
  }
  func.func @transform_7(%arg0: i32) -> (i32, i32) {
    %c0_i32 = arith.constant 0 : i32
    %c0_i32_0 = arith.constant 0 : i32
    return %c0_i32, %arg0 : i32, i32
  }
}

</mosaic_0001>

<bundles_post_ra>
// kernel: tpu_custom_call.1
= control target key start
LH: loop header
LB: loop body
LE: loop exit
PB: predicated region body
PF: predicated region fallthrough
CT: control target
= control target key end

     0   :  { %s515_s0 = inlined_call_operand.vmem [shape: f32[1,128], index: 0, kind: input, shape index: {}]   ;;  %s516_s1 = inlined_call_operand.vmem [shape: f32[64,1], index: 1, kind: input, shape index: {}]   ;;  %s517_s2 = inlined_call_operand.vmem [shape: f32[64,1], index: 2, kind: input, shape index: {}]   ;;  %s518_s3 = inlined_call_operand.vmem [shape: bf16[32,64], index: 3, kind: input, shape index: {}]   ;;  %s519_s4 = inlined_call_operand.vmem [shape: f32[32,1], index: 4, kind: input, shape index: {}]   ;;  %s520_s5 = inlined_call_operand.vmem [shape: f32[32,1], index: 5, kind: input, shape index: {}]   ;;  %s521_s6 = inlined_call_operand.<no memory space> [shape: f32[1,1], index: 6, kind: input, shape index: {}]   ;;  %s522_s7 = inlined_call_operand.hbm [shape: f32[1,128], index: 7, kind: output, shape index: {}]  }
   0x1   :  { %v12_v0 = vstv %s521_s6 }
   0x2   :  { %13 = vst [vmem:[#allocation2] sm:$0x1] %v12_v0 }
   0x3   :  { %v38_v1 = vld [vmem:[%s517_s2] sm:$0xff]  ;;  %v375_v3 = vmov 0   ;;  %v39_v4 = vld [vmem:[%s517_s2 + $0x8] sm:$0xff]  ;;  %v33_v6 = vld [vmem:[%s516_s1 + $0x18] sm:$0xff] }
   0x4   :  { %v30_v2 = vld [vmem:[%s516_s1] sm:$0xff]  ;;  %348 = vset.pattern.permute.xlu1 %v375_v3  ;;  %347 = vset.pattern.permute.xlu0 %v375_v3  ;;  %v31_v5 = vld [vmem:[%s516_s1 + $0x8] sm:$0xff]  ;;  %v32_v7 = vld [vmem:[%s516_s1 + $0x10] sm:$0xff] }
   0x5   :  { %116 = vperm.xlu1 %348, %v38_v1   ;;  %62 = vperm.xlu0 %347, %v30_v2  }
   0x9   :  { %121 = vperm.xlu1 %348, %v39_v4   ;;  %67 = vperm.xlu0 %347, %v31_v5  }
   0xd   :  { %77 = vperm.xlu1 %348, %v33_v6   ;;  %72 = vperm.xlu0 %347, %v32_v7  }
   0xe   :  { %14 = vsyncpa [#allocation4], 0  ;;  %v41_v8 = vld [vmem:[%s517_s2 + $0x18] sm:$0xff]  ;;  %v40_v9 = vld [vmem:[%s517_s2 + $0x10] sm:$0xff]  ;;  %vm204_vm0 = vcmask 523264  }
   0xf   :  { %v35_v10 = vld [vmem:[%s516_s1 + $0x28] sm:$0xff]  ;;  %v34_v11 = vld [vmem:[%s516_s1 + $0x20] sm:$0xff]  ;;  %v37_v14 = vld [vmem:[%s516_s1 + $0x38] sm:$0xff] }
  0x10   :  { %v43_v12 = vld [vmem:[%s517_s2 + $0x28] sm:$0xff]  ;;  %v42_v13 = vld [vmem:[%s517_s2 + $0x20] sm:$0xff]  ;;  %v36_v15 = vld [vmem:[%s516_s1 + $0x30] sm:$0xff] }
  0x11   :  { %131 = vperm.xlu1 %348, %v41_v8   ;;  %126 = vperm.xlu0 %347, %v40_v9   ;;  %v45_v16 = vld [vmem:[%s517_s2 + $0x38] sm:$0xff]  ;;  %v44_v17 = vld [vmem:[%s517_s2 + $0x30] sm:$0xff]  ;;  %v51_v18 = vld [vmem:[%s519_s4 + $0x8] sm:$0xff] }
  0x12   :  { %v50_v19 = vld [vmem:[%s519_s4] sm:$0xff]  ;;  %v53_v20 = vld [vmem:[%s519_s4 + $0x18] sm:$0xff]  ;;  %v52_v21 = vld [vmem:[%s519_s4 + $0x10] sm:$0xff] }
  0x13   :  { %v349_v22 = vld [vmem:[%s518_s3] sm:$0xff]   ;;  %v55_v23 = vld [vmem:[%s520_s5 + $0x8] sm:$0xff]  ;;  %v57_v25 = vld [vmem:[%s520_s5 + $0x18] sm:$0xff] }
  0x14   :  { %v54_v24 = vld [vmem:[%s520_s5] sm:$0xff]  ;;  %341 = vmatprep.mubr.msk.bf16.mxu0 %vm204_vm0, %v349_v22  ;;  %v56_v26 = vld [vmem:[%s520_s5 + $0x10] sm:$0xff]  ;;  %v350_v9 = vld [vmem:[%s518_s3 + $0x8] sm:$0xff]   ;;  %s376_s3 = smov [#allocation3]  }
  0x15   :  { %87 = vperm.xlu1 %348, %v35_v10   ;;  %82 = vperm.xlu0 %347, %v34_v11   ;;  %v58_v27 = vld [vmem:[#allocation2] sm:$0x1]  ;;  %s314_s27 = sshll.u32 %s376_s3, 4  ;;  %s315_s27 = int_to_ptr.vmem [resolvable:$true] %s314_s27 }
  0x16   :  { %v322_v28 = vld [vmem:[%s515_s0] ss:$0 sm:$0xff]  ;;  %s351_s28 = scalar_lea.vmem %s315_s27, 16  ;;  %s355_s29 = scalar_lea.vmem %s315_s27, 32 }
  0x17   :  { %p352_p0 = scmp.ne.s32.totalorder %s315_s27, %s351_s28  ;;  %p356_p1 = scmp.lt.s32.totalorder %s315_s27, %s315_s27 }
  0x18   :  { %p357_p2 = scmp.lt.s32.totalorder %s355_s29, %s351_s28 }
  0x19   :  { %141 = vperm.xlu1 %348, %v43_v12   ;;  %136 = vperm.xlu0 %347, %v42_v13  }
  0x1a   :  { %p358_p3 = por %p357_p2, %p356_p1 }
  0x1c   :  { %p359_p4 = pnand %p358_p3, %p352_p0 }
  0x1d   :  { %97 = vperm.xlu1 %348, %v37_v14   ;;  %92 = vperm.xlu0 %347, %v36_v15  }
  0x21   :  { %151 = vperm.xlu1 %348, %v45_v16   ;;  %146 = vperm.xlu0 %347, %v44_v17  }
  0x25   :  { %181 = vperm.xlu1 %348, %v51_v18   ;;  %176 = vperm.xlu0 %347, %v50_v19  }
  0x29   :  { %191 = vperm.xlu1 %348, %v53_v20   ;;  %186 = vperm.xlu0 %347, %v52_v21  }
  0x2d   :  { %271 = vperm.xlu1 %348, %v55_v23   ;;  %266 = vperm.xlu0 %347, %v54_v24  }
  0x31   :  { %281 = vperm.xlu1 %348, %v57_v25   ;;  %276 = vperm.xlu0 %347, %v56_v26  }
  0x35   :  { %299 = vperm.xlu0 %347, %v58_v27  }
  0x84   :  { %v117_v29 = vpop.permute.xlu1 %116  ;;  %v63_v30 = vpop.permute.xlu0 %62 }
  0x85   :  { %v106_v31 = vmul.f32 %v322_v28, %v63_v30 }
  0x87   :  { %v154_v34 = vadd.f32 %v117_v29, %v106_v31 }
  0x88   :  { %v122_v32 = vpop.permute.xlu1 %121  ;;  %v68_v33 = vpop.permute.xlu0 %67 }
  0x89   :  { %v107_v35 = vmul.f32 %v322_v28, %v68_v33  ;;  %v162_v39 = vmax.f32 %v154_v34, 0.0 }
  0x8b   :  { %v155_v36 = vadd.f32 %v122_v32, %v107_v35 }
  0x8c   :  { %v78_v37 = vpop.permute.xlu1 %77  ;;  %v73_v38 = vpop.permute.xlu0 %72 }
  0x8d   :  { %v163_v40 = vmax.f32 %v155_v36, 0.0  ;;  %v109_v41 = vmul.f32 %v322_v28, %v78_v37  ;;  %v108_v42 = vmul.f32 %v322_v28, %v73_v38  ;;  %v302_v36 = vlaneseq }
  0x8f   :  { %v170_v43 = vpack.c.bf16 %v163_v40, %v162_v39  ;;  %v303_v39 = vshrl.u32 %v302_v36, 7 }
  0x90   :  { %v132_v44 = vpop.permute.xlu1 %131  ;;  %v127_v45 = vpop.permute.xlu0 %126 }
  0x91   :  { %v157_v46 = vadd.f32 %v132_v44, %v109_v41  ;;  %v156_v47 = vadd.f32 %v127_v45, %v108_v42  ;;  %333 = vmatprep.subr.bf16.mxu0 %v170_v43  ;;  %v304_v42 = vsub.s32 0, %v303_v39 }
  0x92   :  { %334 = vmatpush3.bf16.msra.mxu0 %v170_v43 }
  0x93   :  { %v165_v48 = vmax.f32 %v157_v46, 0.0  ;;  %v164_v49 = vmax.f32 %v156_v47, 0.0 }
  0x94   :  { %v88_v50 = vpop.permute.xlu1 %87  ;;  %v83_v51 = vpop.permute.xlu0 %82 }
  0x95   :  { %v171_v52 = vpack.c.bf16 %v165_v48, %v164_v49  ;;  %v111_v53 = vmul.f32 %v322_v28, %v88_v50  ;;  %v110_v54 = vmul.f32 %v322_v28, %v83_v51 }
  0x97   :  { %335 = vmatprep.subr.bf16.mxu0 %v171_v52 }
  0x98   :  { %v142_v55 = vpop.permute.xlu1 %141  ;;  %336 = vmatpush3.bf16.msra.mxu0 %v171_v52  ;;  %v137_v56 = vpop.permute.xlu0 %136 }
  0x99   :  { %v159_v57 = vadd.f32 %v142_v55, %v111_v53  ;;  %v158_v58 = vadd.f32 %v137_v56, %v110_v54 }
  0x9b   :  { %v167_v59 = vmax.f32 %v159_v57, 0.0  ;;  %v166_v60 = vmax.f32 %v158_v58, 0.0 }
  0x9c   :  { %v98_v61 = vpop.permute.xlu1 %97  ;;  %v93_v62 = vpop.permute.xlu0 %92 }
  0x9d   :  { %v172_v63 = vpack.c.bf16 %v167_v59, %v166_v60  ;;  %v113_v0 = vmul.f32 %v322_v28, %v98_v61  ;;  %v112_v1 = vmul.f32 %v322_v28, %v93_v62 }
  0x9f   :  { %337 = vmatprep.subr.bf16.mxu0 %v172_v63 }
  0xa0   :  { %v152_v2 = vpop.permute.xlu1 %151  ;;  %338 = vmatpush3.bf16.msra.mxu0 %v172_v63  ;;  %v147_v3 = vpop.permute.xlu0 %146 }
  0xa1   :  { %v161_v4 = vadd.f32 %v152_v2, %v113_v0  ;;  %v160_v5 = vadd.f32 %v147_v3, %v112_v1 }
  0xa3   :  { %v169_v6 = vmax.f32 %v161_v4, 0.0  ;;  %v168_v7 = vmax.f32 %v160_v5, 0.0 }
  0xa4   :  { %v177_v10 = vpop.permute.xlu0 %176  ;;  %v182_v11 = vpop.permute.xlu1 %181 }
  0xa5   :  { %v173_v8 = vpack.c.bf16 %v169_v6, %v168_v7 }
  0xa7   :  { %339 = vmatprep.subr.bf16.mxu0 %v173_v8 }
  0xa8   :  { %340 = vmatpush3.bf16.msra.mxu0 %v173_v8  ;;  %v187_v12 = vpop.permute.xlu0 %186  ;;  %v192_v13 = vpop.permute.xlu1 %191 }
  0xab   :  { %342 = vmatmul.mubr.msk.bf16.vlgmr.msra.gmra.mrb[0].mxu0 %vm204_vm0, %v350_v9 }
  0xac   :  { %v267_v19 = vpop.permute.xlu0 %266  ;;  %v272_v24 = vpop.permute.xlu1 %271 }
  0xb0   :  { %v277_v30 = vpop.permute.xlu0 %276  ;;  %v282_v33 = vpop.permute.xlu1 %281 }
  0xb4   :  { %v300_v44 = vpop.permute.xlu0 %299 }
  0xb5   :  { %v305_v46 = vrot.slane %v300_v44, %v304_v42 }
 0x17e   :  { %v343_v14 = vpop.f32.mrb[0].mxu0 }
 0x17f   :  { %v245_v15 = vpop.f32.mrb[1].mxu0  ;;  %v254_v16 = vadd.f32 %v343_v14, %v187_v12 }
 0x180   :  { %v246_v17 = vadd.f32 %v245_v15, %v177_v10  ;;  %v344_v18 = vpop.f32.mrb[2].mxu0 }
 0x181   :  { %v248_v20 = vpop.f32.mrb[3].mxu0  ;;  %v257_v22 = vadd.f32 %v344_v18, %v192_v13  ;;  %v262_v25 = vmax.f32 %v254_v16, 0.0 }
 0x182   :  { %v260_v21 = vmax.f32 %v246_v17, 0.0  ;;  %v249_v23 = vadd.f32 %v248_v20, %v182_v11 }
 0x183   :  { %v263_v28 = vmax.f32 %v257_v22, 0.0  ;;  %v286_v31 = vmul.f32 %v277_v30, %v262_v25 }
 0x184   :  { %v261_v26 = vmax.f32 %v249_v23, 0.0  ;;  %v284_v27 = vmul.f32 %v267_v19, %v260_v21 }
 0x185   :  { %v287_v34 = vmul.f32 %v282_v33, %v263_v28 }
 0x186   :  { %v285_v29 = vmul.f32 %v272_v24, %v261_v26 }
 0x188   :  { %v288_v32 = vadd.f32 %v285_v29, %v284_v27 }
 0x18a   :  { %v289_v35 = vadd.f32 %v288_v32, %v286_v31 }
 0x18c   :  { %v290_v37 = vadd.f32 %v289_v35, %v287_v34 }
 0x18e   :  { %v291_v38 = vrot.slane %v290_v37, 4 }
 0x190   :  { %v292_v40 = vadd.f32 %v291_v38, %v290_v37 }
 0x192   :  { %v293_v41 = vrot.slane %v292_v40, 2 }
 0x194   :  { %v294_v43 = vadd.f32 %v293_v41, %v292_v40 }
 0x196   :  { %v295_v45 = vrot.slane %v294_v43, 1 }
 0x198   :  { %v296_v47 = vadd.f32 %v295_v45, %v294_v43 }
 0x19a   :  { %v306_v48 = vadd.f32 %v305_v46, %v296_v47 }
 0x19c   :  { %307 = vst [vmem:[#allocation3] sm:$0x1] %v306_v48 }
 0x19d   :  { %362 = shalt.err (!%p359_p4)
}
 0x19e   :  { %s363_s9 = scalar_lea.hbm %s522_s7, 16 }
 0x19f   :  { %p364_p5 = scmp.ne.s32.totalorder %s522_s7, %s363_s9  ;;  %p367_p6 = scmp.lt.u32.totalorder %s363_s9, %s522_s7 }
 0x1a1   :  { %p369_p7 = pnand %p367_p6, %p364_p5 }
 0x1a3   :  { %372 = shalt.err (!%p369_p7)
}
 0x1a4   :  { %317 = dma.vmem_to_hbm [thread:$0]  %s315_s27, 16, %s522_s7, [#allocation4]  }
 0x1a5   :  { %373 = dma.done.wait [#allocation4], 16  }
 0x1a6   :  { %374 = vsyncadd [#allocation4], 4294967280 }
 0x1a7   :  { %321 = vsyncpa [#allocation4], 1 }

</bundles_post_ra>
